<compile_context>
chip_gen: v5e
topology: v5e:2x2
jax: 0.10.0
libtpu: 0.0.40
codegen_flags: <defaults>
</compile_context>

<pallas_src>
import functools

import numpy as np
import jax
import jax.numpy as jnp
from jax import lax
from jax.experimental import pallas as pl
from jax.experimental.pallas import tpu as pltpu


def _basic_block_kernel(x_ref, w1_ref, b1_ref, w2_ref, b2_ref, out_ref, *,
                        H, compute_dtype):
    """Fused BasicBlock forward on one batch block (output-shift conv).

    x_ref   : (M, W*C)       input rows, M = nb*H (also the residual identity)
    w1_ref  : (W*C, 3*W*C)   banded conv1 weights [ky=0|ky=1|ky=2], BN1 scale folded
    b1_ref  : (1, W*C)       BN1 bias, tiled over W
    w2_ref  : (W*C, 3*W*C)   banded conv2 weights, BN2 scale folded
    b2_ref  : (1, W*C)       BN2 bias, tiled over W
    out_ref : (M, W*C)
    """
    M, wc = x_ref.shape

    # Per-image row index (0..H-1) as a (M, wc) iota -> boundary masks for the
    # +/-1 H-shifts.  (nb, H, wc) -> (M, wc) reshape is a no-op retile when
    # H % 8 == 0 and wc % 128 == 0 (true here).
    rim = lax.broadcasted_iota(jnp.int32, (M // H, H, wc), 1).reshape(M, wc)
    not_first = rim != 0          # output rows that have an input row h-1
    not_last = rim != (H - 1)     # output rows that have an input row h+1

    def conv3x3(x2d, w_ref):
        # One MXU matmul (M, wc) x (wc, 3*wc): the W-direction taps and the
        # W-direction zero padding live inside the banded weights.  The
        # H-direction halo is handled by shifting the three lane-aligned column
        # chunks of the result (XLU roll + VPU mask) — no scratch, no pad copy.
        y = jnp.dot(x2d, w_ref[...], preferred_element_type=jnp.float32)
        y0 = y[:, 0 * wc:1 * wc]          # ky = 0 -> contribution of input row h-1
        y1 = y[:, 1 * wc:2 * wc]          # ky = 1 -> input row h
        y2 = y[:, 2 * wc:3 * wc]          # ky = 2 -> contribution of input row h+1
        y0s = jnp.where(not_first, pltpu.roll(y0, 1, 0), 0.0)
        y2s = jnp.where(not_last, pltpu.roll(y2, M - 1, 0), 0.0)
        return y1 + y0s + y2s

    xv = x_ref[...]
    # conv1 + BN1 (scale folded into w1, bias added here) + ReLU   (f32 epilogue)
    h1 = jnp.maximum(conv3x3(xv.astype(compute_dtype), w1_ref) + b1_ref[...], 0.0)
    # conv2 + BN2 + residual + ReLU                                 (f32 epilogue)
    out = (conv3x3(h1.astype(compute_dtype), w2_ref) + b2_ref[...]
           + xv.astype(jnp.float32))
    out_ref[...] = jnp.maximum(out, 0.0).astype(out_ref.dtype)


def _fold_bn(gamma, beta, mean, var, eps):
    scale = gamma / jnp.sqrt(var + eps)
    return scale, beta - mean * scale


def _banded_conv_weights(w_oihw, width, scale, compute_dtype):
    """Fold a 3x3 conv's W-direction taps (and W zero padding) plus the BN
    per-output-channel scale into one (W*Cin, 3*W*Cout) matrix whose three
    W*Cout-wide column chunks correspond to kernel rows ky = 0, 1, 2:
        B[ky][wi*Cin+ci, wo*Cout+co] = w[co, ci, ky, wi-wo+1] * scale[co]
                                        if 0 <= wi-wo+1 < 3 else 0
    """
    cout, cin, kh, kw = w_oihw.shape
    wk = jnp.transpose(w_oihw, (2, 3, 1, 0)).astype(jnp.float32)      # (kh,kw,Ci,Co)
    wk = wk * scale.astype(jnp.float32)[None, None, None, :]
    wi = jnp.arange(width)[:, None]
    wo = jnp.arange(width)[None, :]
    kx = wi - wo + 1                                                  # (W, W)
    valid = (kx >= 0) & (kx < kw)
    blocks = wk[:, jnp.clip(kx, 0, kw - 1)]                           # (kh,W,W,Ci,Co)
    blocks = jnp.where(valid[None, :, :, None, None], blocks, 0.0)
    band = jnp.transpose(blocks, (0, 1, 3, 2, 4)).reshape(kh, width * cin,
                                                          width * cout)
    wcat = jnp.concatenate([band[k] for k in range(kh)], axis=1)      # (W*Ci, 3*W*Co)
    return wcat.astype(compute_dtype)


def basic_block_forward(x_nchw, params, eps=1e-5, *,
                        compute_dtype=jnp.bfloat16, batch_blocks=1):
    """BasicBlock forward (stride=1, dilation=1, downsample=None). NCHW in/out.

    batch_blocks=1 -> whole batch folded into one matmul M (best for these tiny
    matmuls on every TPU generation); use batch_blocks>1 only when the per-TC
    M = (N/batch_blocks)*H stays >= 128 rows (v7x megacore guidance).
    """
    N, C, H, W = x_nchw.shape
    cout1, cin1 = params["w1"].shape[:2]
    cout2 = params["w2"].shape[0]
    assert cin1 == C and cout1 == cout2 == C, \
        "residual path without downsample requires inplanes == planes"
    assert N % batch_blocks == 0
    nb = N // batch_blocks
    wc = W * C
    if batch_blocks > 1:
        assert (nb * H) % 8 == 0 and wc % 128 == 0, \
            "sub-batch blocks must tile to (8, 128)"

    s1, b1 = _fold_bn(params["gamma1"], params["beta1"], params["mean1"],
                      params["var1"], eps)
    s2, b2 = _fold_bn(params["gamma2"], params["beta2"], params["mean2"],
                      params["var2"], eps)

    # One-time wrapper-side layout plumbing (free relative to the kernel).
    w1cat = _banded_conv_weights(params["w1"], W, s1, compute_dtype)  # (wc, 3*wc)
    w2cat = _banded_conv_weights(params["w2"], W, s2, compute_dtype)
    b1r = jnp.tile(b1.astype(jnp.float32), W).reshape(1, wc)
    b2r = jnp.tile(b2.astype(jnp.float32), W).reshape(1, wc)
    x_rows = jnp.transpose(x_nchw, (0, 2, 3, 1)).reshape(N * H, wc)   # lane-dense

    # Explicit VMEM budget (v7x: 64 MiB physical, 32 MiB default scoped limit).
    cb = jnp.dtype(compute_dtype).itemsize
    xb = x_nchw.dtype.itemsize
    est = (2 * 2 * nb * H * wc * xb            # x + out blocks, double-buffered
           + 2 * 2 * wc * 3 * wc * cb          # both banded weight matrices
           + 2 * 2 * wc * 4                    # biases
           + 6 * nb * H * 3 * wc * 4)          # in-kernel f32 temporaries (generous)
    vmem_limit = int(min(max(2 * est, 32 * 1024 * 1024), 64 * 1024 * 1024))

    kernel = functools.partial(_basic_block_kernel, H=H,
                               compute_dtype=compute_dtype)

    out_rows = pl.pallas_call(
        kernel,
        out_shape=jax.ShapeDtypeStruct((N * H, wc), x_nchw.dtype),
        grid=(batch_blocks,),
        in_specs=[
            pl.BlockSpec((nb * H, wc), lambda i: (i, 0)),
            pl.BlockSpec((wc, 3 * wc), lambda i: (0, 0)),
            pl.BlockSpec((1, wc), lambda i: (0, 0)),
            pl.BlockSpec((wc, 3 * wc), lambda i: (0, 0)),
            pl.BlockSpec((1, wc), lambda i: (0, 0)),
        ],
        out_specs=pl.BlockSpec((nb * H, wc), lambda i: (i, 0)),
        compiler_params=pltpu.CompilerParams(
            dimension_semantics=("parallel",),
            vmem_limit_bytes=vmem_limit),
    )(x_rows, w1cat, b1r, w2cat, b2r)

    return jnp.transpose(out_rows.reshape(N, H, W, C), (0, 3, 1, 2))


def reference_forward(x_nchw, params, eps=1e-5):
    """Pure-JAX (lax.conv) reference for validation."""
    s1, b1 = _fold_bn(params["gamma1"], params["beta1"], params["mean1"],
                      params["var1"], eps)
    s2, b2 = _fold_bn(params["gamma2"], params["beta2"], params["mean2"],
                      params["var2"], eps)
    dn = ("NCHW", "OIHW", "NCHW")
    out = lax.conv_general_dilated(x_nchw, params["w1"], (1, 1),
                                   [(1, 1), (1, 1)], dimension_numbers=dn)
    out = out * s1[None, :, None, None] + b1[None, :, None, None]
    out = jnp.maximum(out, 0.0)
    out = lax.conv_general_dilated(out, params["w2"], (1, 1),
                                   [(1, 1), (1, 1)], dimension_numbers=dn)
    out = out * s2[None, :, None, None] + b2[None, :, None, None]
    out = out + x_nchw
    return jnp.maximum(out, 0.0)


if __name__ == "__main__":
    # BasicBlock(inplanes=8, planes=8, stride=1, dilation=1, downsample=None)
    # C=8, W=16 -> W*C = 128 = one full lane row (lane-dense layout).
    N, C, H, W = 2, 8, 16, 16
    key = jax.random.PRNGKey(0)
    kx, kw1, kw2 = jax.random.split(key, 3)

    x = jax.random.normal(kx, (N, C, H, W), dtype=jnp.float32)

    params = {
        # conv weights (OIHW), bias=False
        "w1": 0.1 * jax.random.normal(kw1, (C, C, 3, 3), dtype=jnp.float32),
        "w2": 0.1 * jax.random.normal(kw2, (C, C, 3, 3), dtype=jnp.float32),
        # BN1 / BN2 parameters + running stats (deterministic, non-trivial)
        "gamma1": 1.0 + 0.05 * jnp.arange(C, dtype=jnp.float32),
        "beta1": 0.01 * jnp.arange(C, dtype=jnp.float32),
        "mean1": 0.02 * jnp.arange(C, dtype=jnp.float32),
        "var1": 1.0 + 0.03 * jnp.arange(C, dtype=jnp.float32),
        "gamma2": 1.0 - 0.02 * jnp.arange(C, dtype=jnp.float32),
        "beta2": -0.01 * jnp.arange(C, dtype=jnp.float32),
        "mean2": -0.01 * jnp.arange(C, dtype=jnp.float32),
        "var2": 1.0 + 0.05 * jnp.arange(C, dtype=jnp.float32),
    }

    ref = jax.block_until_ready(reference_forward(x, params))

    # Exact-precision path: f32 MXU operands, tight tolerance.
    out_f32 = jax.block_until_ready(
        basic_block_forward(x, params, compute_dtype=jnp.float32))
    np.testing.assert_allclose(np.asarray(out_f32), np.asarray(ref),
                               rtol=1e-4, atol=1e-4)

    # Default perf path (bf16 MXU operands, f32 accumulate): loose sanity check.
    out_bf16 = jax.block_until_ready(basic_block_forward(x, params))
    np.testing.assert_allclose(np.asarray(out_bf16), np.asarray(ref),
                               rtol=5e-2, atol=5e-2)

    print("KERNEL_OK")
</pallas_src>

<mosaic_0001>
module attributes {stable_mosaic.version = 11 : i64} {
  func.func @_basic_block_kernel(%arg0: i32, %arg1: memref<32x128xf32, #tpu.memory_space<vmem>>, %arg2: memref<128x384xf32, #tpu.memory_space<vmem>>, %arg3: memref<1x128xf32, #tpu.memory_space<vmem>>, %arg4: memref<128x384xf32, #tpu.memory_space<vmem>>, %arg5: memref<1x128xf32, #tpu.memory_space<vmem>>, %arg6: memref<32x128xf32, #tpu.memory_space<vmem>>) attributes {dimension_semantics = [#tpu.dimension_semantics<parallel>], iteration_bounds = array<i64: 1>, scalar_prefetch = 0 : i64, scratch_operands = 0 : i64, tpu.core_type = #tpu.core_type<tc>, window_params = [{transform_indices = @transform_0, window_bounds = array<i64: 32, 128>}, {pipeline_mode = #tpu.pipeline_mode<synchronous>, transform_indices = @transform_1, window_bounds = array<i64: 128, 384>}, {pipeline_mode = #tpu.pipeline_mode<synchronous>, transform_indices = @transform_2, window_bounds = array<i64: 1, 128>}, {pipeline_mode = #tpu.pipeline_mode<synchronous>, transform_indices = @transform_3, window_bounds = array<i64: 128, 384>}, {pipeline_mode = #tpu.pipeline_mode<synchronous>, transform_indices = @transform_4, window_bounds = array<i64: 1, 128>}, {transform_indices = @transform_5, window_bounds = array<i64: 32, 128>}]} {
    %0 = tpu.iota {dimensions = array<i32: 1>} : vector<2x16x128xi32>
    %1 = vector.shape_cast %0 : vector<2x16x128xi32> to vector<32x128xi32>
    %c0_i32 = arith.constant 0 : i32
    %2 = vector.broadcast %c0_i32 : i32 to vector<32x128xi32>
    %3 = arith.cmpi ne, %1, %2 : vector<32x128xi32>
    %c15_i32 = arith.constant 15 : i32
    %4 = vector.broadcast %c15_i32 : i32 to vector<32x128xi32>
    %5 = arith.cmpi ne, %1, %4 : vector<32x128xi32>
    %c0 = arith.constant 0 : index
    %c0_0 = arith.constant 0 : index
    %6 = vector.load %arg1[%c0, %c0_0] : memref<32x128xf32, #tpu.memory_space<vmem>>, vector<32x128xf32>
    %c0_1 = arith.constant 0 : index
    %c0_2 = arith.constant 0 : index
    %7 = vector.load %arg2[%c0_1, %c0_2] : memref<128x384xf32, #tpu.memory_space<vmem>>, vector<128x384xf32>
    %cst = arith.constant dense<0.000000e+00> : vector<32x384xf32>
    %8 = tpu.matmul %6, %7, %cst {dimension_numbers = #tpu.dot_dimension_numbers<[1], [0], [0], [1], [0, 0, 1, 1], [], []>} : vector<32x128xf32>, vector<128x384xf32>, vector<32x384xf32> -> vector<32x384xf32>
    %9 = vector.extract_strided_slice %8 {offsets = [0, 0], sizes = [32, 128], strides = [1, 1]} : vector<32x384xf32> to vector<32x128xf32>
    %10 = vector.extract_strided_slice %8 {offsets = [0, 128], sizes = [32, 128], strides = [1, 1]} : vector<32x384xf32> to vector<32x128xf32>
    %11 = vector.extract_strided_slice %8 {offsets = [0, 256], sizes = [32, 128], strides = [1, 1]} : vector<32x384xf32> to vector<32x128xf32>
    %c1_i32 = arith.constant 1 : i32
    %12 = tpu.dynamic_rotate %9 by %c1_i32 dim 0 : vector<32x128xf32>, i32 -> vector<32x128xf32>
    %cst_3 = arith.constant 0.000000e+00 : f32
    %13 = vector.broadcast %cst_3 : f32 to vector<32x128xf32>
    %14 = arith.select %3, %12, %13 : vector<32x128xi1>, vector<32x128xf32>
    %c31_i32 = arith.constant 31 : i32
    %15 = tpu.dynamic_rotate %11 by %c31_i32 dim 0 : vector<32x128xf32>, i32 -> vector<32x128xf32>
    %cst_4 = arith.constant 0.000000e+00 : f32
    %16 = vector.broadcast %cst_4 : f32 to vector<32x128xf32>
    %17 = arith.select %5, %15, %16 : vector<32x128xi1>, vector<32x128xf32>
    %18 = arith.addf %10, %14 : vector<32x128xf32>
    %19 = arith.addf %18, %17 : vector<32x128xf32>
    %c0_5 = arith.constant 0 : index
    %c0_6 = arith.constant 0 : index
    %20 = vector.load %arg3[%c0_5, %c0_6] : memref<1x128xf32, #tpu.memory_space<vmem>>, vector<1x128xf32>
    %21 = vector.broadcast %20 : vector<1x128xf32> to vector<32x128xf32>
    %22 = arith.addf %19, %21 : vector<32x128xf32>
    %cst_7 = arith.constant 0.000000e+00 : f32
    %23 = vector.broadcast %cst_7 : f32 to vector<32x128xf32>
    %24 = arith.maximumf %22, %23 : vector<32x128xf32>
    %c0_8 = arith.constant 0 : index
    %c0_9 = arith.constant 0 : index
    %25 = vector.load %arg4[%c0_8, %c0_9] : memref<128x384xf32, #tpu.memory_space<vmem>>, vector<128x384xf32>
    %cst_10 = arith.constant dense<0.000000e+00> : vector<32x384xf32>
    %26 = tpu.matmul %24, %25, %cst_10 {dimension_numbers = #tpu.dot_dimension_numbers<[1], [0], [0], [1], [0, 0, 1, 1], [], []>} : vector<32x128xf32>, vector<128x384xf32>, vector<32x384xf32> -> vector<32x384xf32>
    %27 = vector.extract_strided_slice %26 {offsets = [0, 0], sizes = [32, 128], strides = [1, 1]} : vector<32x384xf32> to vector<32x128xf32>
    %28 = vector.extract_strided_slice %26 {offsets = [0, 128], sizes = [32, 128], strides = [1, 1]} : vector<32x384xf32> to vector<32x128xf32>
    %29 = vector.extract_strided_slice %26 {offsets = [0, 256], sizes = [32, 128], strides = [1, 1]} : vector<32x384xf32> to vector<32x128xf32>
    %c1_i32_11 = arith.constant 1 : i32
    %30 = tpu.dynamic_rotate %27 by %c1_i32_11 dim 0 : vector<32x128xf32>, i32 -> vector<32x128xf32>
    %cst_12 = arith.constant 0.000000e+00 : f32
    %31 = vector.broadcast %cst_12 : f32 to vector<32x128xf32>
    %32 = arith.select %3, %30, %31 : vector<32x128xi1>, vector<32x128xf32>
    %c31_i32_13 = arith.constant 31 : i32
    %33 = tpu.dynamic_rotate %29 by %c31_i32_13 dim 0 : vector<32x128xf32>, i32 -> vector<32x128xf32>
    %cst_14 = arith.constant 0.000000e+00 : f32
    %34 = vector.broadcast %cst_14 : f32 to vector<32x128xf32>
    %35 = arith.select %5, %33, %34 : vector<32x128xi1>, vector<32x128xf32>
    %36 = arith.addf %28, %32 : vector<32x128xf32>
    %37 = arith.addf %36, %35 : vector<32x128xf32>
    %c0_15 = arith.constant 0 : index
    %c0_16 = arith.constant 0 : index
    %38 = vector.load %arg5[%c0_15, %c0_16] : memref<1x128xf32, #tpu.memory_space<vmem>>, vector<1x128xf32>
    %39 = vector.broadcast %38 : vector<1x128xf32> to vector<32x128xf32>
    %40 = arith.addf %37, %39 : vector<32x128xf32>
    %41 = arith.addf %40, %6 : vector<32x128xf32>
    %cst_17 = arith.constant 0.000000e+00 : f32
    %42 = vector.broadcast %cst_17 : f32 to vector<32x128xf32>
    %43 = arith.maximumf %41, %42 : vector<32x128xf32>
    %c0_18 = arith.constant 0 : index
    %c0_19 = arith.constant 0 : index
    %44 = vector.load %arg6[%c0_18, %c0_19] : memref<32x128xf32, #tpu.memory_space<vmem>>, vector<32x128xf32>
    tpu.vector_store %arg6[%c0_18, %c0_19], %43 {strides = array<i32>} : memref<32x128xf32, #tpu.memory_space<vmem>>, vector<32x128xf32>,
    return
  }
  func.func @transform_0(%arg0: i32) -> (i32, i32) {
    %c0_i32 = arith.constant 0 : i32
    %c0_i32_0 = arith.constant 0 : i32
    return %arg0, %c0_i32 : i32, i32
  }
  func.func @transform_1(%arg0: i32) -> (i32, i32) {
    %c0_i32 = arith.constant 0 : i32
    %c0_i32_0 = arith.constant 0 : i32
    %c0_i32_1 = arith.constant 0 : i32
    return %c0_i32, %c0_i32_0 : i32, i32
  }
  func.func @transform_2(%arg0: i32) -> (i32, i32) {
    %c0_i32 = arith.constant 0 : i32
    %c0_i32_0 = arith.constant 0 : i32
    %c0_i32_1 = arith.constant 0 : i32
    return %c0_i32, %c0_i32_0 : i32, i32
  }
  func.func @transform_3(%arg0: i32) -> (i32, i32) {
    %c0_i32 = arith.constant 0 : i32
    %c0_i32_0 = arith.constant 0 : i32
    %c0_i32_1 = arith.constant 0 : i32
    return %c0_i32, %c0_i32_0 : i32, i32
  }
  func.func @transform_4(%arg0: i32) -> (i32, i32) {
    %c0_i32 = arith.constant 0 : i32
    %c0_i32_0 = arith.constant 0 : i32
    %c0_i32_1 = arith.constant 0 : i32
    return %c0_i32, %c0_i32_0 : i32, i32
  }
  func.func @transform_5(%arg0: i32) -> (i32, i32) {
    %c0_i32 = arith.constant 0 : i32
    %c0_i32_0 = arith.constant 0 : i32
    return %arg0, %c0_i32 : i32, i32
  }
}

</mosaic_0001>

<bundles_post_ra>
// kernel: tpu_custom_call.1
= control target key start
LH: loop header
LB: loop body
LE: loop exit
PB: predicated region body
PF: predicated region fallthrough
CT: control target
= control target key end

     0   :  { %10 = vsyncpa [#allocation3], 0  ;;  %s818_s0 = inlined_call_operand.hbm [shape: f32[32,128], index: 0, kind: input, shape index: {}]   ;;  %s819_s1 = inlined_call_operand.hbm [shape: f32[128,384], index: 1, kind: input, shape index: {}]   ;;  %s820_s2 = inlined_call_operand.vmem [shape: f32[1,128], index: 2, kind: input, shape index: {}]   ;;  %s821_s3 = inlined_call_operand.hbm [shape: f32[128,384], index: 3, kind: input, shape index: {}]   ;;  %s822_s4 = inlined_call_operand.vmem [shape: f32[1,128], index: 4, kind: input, shape index: {}]   ;;  %s823_s5 = inlined_call_operand.hbm [shape: f32[32,128], index: 5, kind: output, shape index: {}]  }
   0x1   :  { %11 = vsyncpa [#allocation6], 0  ;;  %s30_s20 = sshll.u32 %s819_s1, 4  ;;  %s31_s20 = int_to_ptr.hbm [resolvable:$true] %s30_s20 }
   0x2   :  { %12 = vsyncpa [#allocation4], 0  ;;  %s611_s21 = smov [#allocation5]   ;;  %s17_s25 = sshll.u32 %s818_s0, 4  ;;  %s18_s25 = int_to_ptr.hbm [resolvable:$true] %s17_s25 }
   0x3   :  { %s32_s22 = sshll.u32 %s611_s21, 4  ;;  %s612_s26 = smov 384   ;;  %s33_s22 = int_to_ptr.vmem [resolvable:$true] %s32_s22 }
   0x4   :  { %s613_s27 = smov 24   ;;  %s614_s28 = smov [#allocation2]  }
   0x5   :  { %38 = dma.hbm_to_vmem [thread:$0]  %s31_s20, 6144, %s33_s22, [#allocation6], %s612_s26, %s612_s26, %s613_s27  }
   0x6   :  { %s19_s29 = sshll.u32 %s614_s28, 4  ;;  %s615_s30 = smov 128   ;;  %s20_s29 = int_to_ptr.vmem [resolvable:$true] %s19_s29 }
   0x7   :  { %s616_s6 = smov 8   ;;  %s45_s8 = sshll.u32 %s821_s3, 4  ;;  %s46_s8 = int_to_ptr.hbm [resolvable:$true] %s45_s8 }
   0x8   :  { %25 = dma.hbm_to_vmem [thread:$0]  %s18_s25, 512, %s20_s29, [#allocation3], %s615_s30, %s615_s30, %s616_s6  }
   0x9   :  { %s617_s9 = smov [#allocation7]  }
   0xa   :  { %s47_s0 = sshll.u32 %s617_s9, 4  ;;  %s48_s0 = int_to_ptr.vmem [resolvable:$true] %s47_s0 }
   0xb   :  { %53 = dma.hbm_to_vmem [thread:$0]  %s46_s8, 6144, %s48_s0, [#allocation6], %s612_s26, %s612_s26, %s613_s27  }
   0xc   :  { %605 = dma.done.wait [#allocation3], 512  }
   0xd   :  { %606 = vsyncadd [#allocation3], 4294966784 }
   0xe   :  { %607 = dma.done.wait [#allocation6], 12288  }
   0xf   :  { %608 = vsyncadd [#allocation6], 4294955008  ;;  %v124_v0 = vld [vmem:[#allocation5 + $0x168] sm:$0xff]  ;;  %v126_v1 = vld [vmem:[#allocation5 + $0x178] sm:$0xff]  ;;  %s453_s15 = sshll.u32 %s823_s5, 4  ;;  %s454_s15 = int_to_ptr.hbm [resolvable:$true] %s453_s15 }
  0x10   :  { %v121_v2 = vld [vmem:[#allocation5 + $0x150] sm:$0xff]  ;;  %127 = vmatpush.msra.mxu0 %v124_v0  ;;  %185 = vmatpush.msra.mxu2 %v126_v1  ;;  %v123_v3 = vld [vmem:[#allocation5 + $0x160] sm:$0xff]  ;;  %v118_v5 = vld [vmem:[#allocation5 + $0x138] sm:$0xff] }
  0x11   :  { %v125_v4 = vld [vmem:[#allocation5 + $0x170] sm:$0xff]  ;;  %v120_v6 = vld [vmem:[#allocation5 + $0x148] sm:$0xff]  ;;  %v122_v7 = vld [vmem:[#allocation5 + $0x158] sm:$0xff] }
  0x12   :  { %156 = vmatpush.msra.mxu1 %v125_v4  ;;  %128 = vmatpush.msra.mxu0 %v121_v2  ;;  %v119_v8 = vld [vmem:[#allocation5 + $0x140] sm:$0xff]  ;;  %v117_v10 = vld [vmem:[#allocation5 + $0x130] sm:$0xff]  ;;  %v116_v11 = vld [vmem:[#allocation5 + $0x128] sm:$0xff] }
  0x13   :  { %186 = vmatpush.msra.mxu2 %v123_v3  ;;  %v115_v9 = vld [vmem:[#allocation5 + $0x120] sm:$0xff]  ;;  %v112_v12 = vld [vmem:[#allocation5 + $0x108] sm:$0xff]  ;;  %v114_v13 = vld [vmem:[#allocation5 + $0x118] sm:$0xff] }
  0x14   :  { %157 = vmatpush.msra.mxu1 %v122_v7  ;;  %129 = vmatpush.msra.mxu0 %v118_v5  ;;  %v113_v14 = vld [vmem:[#allocation5 + $0x110] sm:$0xff]  ;;  %v111_v16 = vld [vmem:[#allocation5 + $0x100] sm:$0xff]  ;;  %v110_v17 = vld [vmem:[#allocation5 + $0xf8] sm:$0xff] }
  0x15   :  { %187 = vmatpush.msra.mxu2 %v120_v6  ;;  %v109_v15 = vld [vmem:[#allocation5 + $0xf0] sm:$0xff]  ;;  %v106_v18 = vld [vmem:[#allocation5 + $0xd8] sm:$0xff]  ;;  %v108_v19 = vld [vmem:[#allocation5 + $0xe8] sm:$0xff] }
  0x16   :  { %158 = vmatpush.msra.mxu1 %v119_v8  ;;  %130 = vmatpush.msra.mxu0 %v115_v9  ;;  %v107_v20 = vld [vmem:[#allocation5 + $0xe0] sm:$0xff]  ;;  %v105_v22 = vld [vmem:[#allocation5 + $0xd0] sm:$0xff]  ;;  %v104_v23 = vld [vmem:[#allocation5 + $0xc8] sm:$0xff] }
  0x17   :  { %188 = vmatpush.msra.mxu2 %v117_v10  ;;  %v103_v21 = vld [vmem:[#allocation5 + $0xc0] sm:$0xff]  ;;  %v100_v24 = vld [vmem:[#allocation5 + $0xa8] sm:$0xff]  ;;  %v102_v25 = vld [vmem:[#allocation5 + $0xb8] sm:$0xff] }
  0x18   :  { %159 = vmatpush.msra.mxu1 %v116_v11  ;;  %131 = vmatpush.msra.mxu0 %v112_v12  ;;  %v101_v26 = vld [vmem:[#allocation5 + $0xb0] sm:$0xff]  ;;  %v99_v28 = vld [vmem:[#allocation5 + $0xa0] sm:$0xff]  ;;  %v98_v29 = vld [vmem:[#allocation5 + $0x98] sm:$0xff] }
  0x19   :  { %189 = vmatpush.msra.mxu2 %v114_v13  ;;  %v97_v27 = vld [vmem:[#allocation5 + $0x90] sm:$0xff]  ;;  %v94_v30 = vld [vmem:[#allocation5 + $0x78] sm:$0xff]  ;;  %v96_v31 = vld [vmem:[#allocation5 + $0x88] sm:$0xff] }
  0x1a   :  { %160 = vmatpush.msra.mxu1 %v113_v14  ;;  %132 = vmatpush.msra.mxu0 %v109_v15  ;;  %v95_v32 = vld [vmem:[#allocation5 + $0x80] sm:$0xff]  ;;  %v93_v34 = vld [vmem:[#allocation5 + $0x70] sm:$0xff]  ;;  %v92_v35 = vld [vmem:[#allocation5 + $0x68] sm:$0xff] }
  0x1b   :  { %190 = vmatpush.msra.mxu2 %v111_v16  ;;  %v91_v33 = vld [vmem:[#allocation5 + $0x60] sm:$0xff]  ;;  %v88_v36 = vld [vmem:[#allocation5 + $0x48] sm:$0xff]  ;;  %v90_v37 = vld [vmem:[#allocation5 + $0x58] sm:$0xff] }
  0x1c   :  { %161 = vmatpush.msra.mxu1 %v110_v17  ;;  %133 = vmatpush.msra.mxu0 %v106_v18  ;;  %v89_v38 = vld [vmem:[#allocation5 + $0x50] sm:$0xff]  ;;  %v87_v40 = vld [vmem:[#allocation5 + $0x40] sm:$0xff]  ;;  %v86_v41 = vld [vmem:[#allocation5 + $0x38] sm:$0xff] }
  0x1d   :  { %191 = vmatpush.msra.mxu2 %v108_v19  ;;  %v85_v39 = vld [vmem:[#allocation5 + $0x30] sm:$0xff]  ;;  %v82_v42 = vld [vmem:[#allocation5 + $0x18] sm:$0xff]  ;;  %v84_v43 = vld [vmem:[#allocation5 + $0x28] sm:$0xff] }
  0x1e   :  { %162 = vmatpush.msra.mxu1 %v107_v20  ;;  %134 = vmatpush.msra.mxu0 %v103_v21  ;;  %v83_v44 = vld [vmem:[#allocation5 + $0x20] sm:$0xff]  ;;  %v81_v46 = vld [vmem:[#allocation5 + $0x10] sm:$0xff]  ;;  %v80_v48 = vld [vmem:[#allocation5 + $0x8] sm:$0xff] }
  0x1f   :  { %192 = vmatpush.msra.mxu2 %v105_v22  ;;  %v79_v45 = vld [vmem:[#allocation5] sm:$0xff]  ;;  %v666_v49 = vld [vmem:[#allocation2 + $0x8] sm:$0xff]  ;;  %v671_v50 = vld [vmem:[#allocation2 + $0x10] sm:$0xff] }
  0x20   :  { %163 = vmatpush.msra.mxu1 %v104_v23  ;;  %135 = vmatpush.msra.mxu0 %v100_v24  ;;  %v661_v47 = vld [vmem:[#allocation2] sm:$0xff]  ;;  %v676_v51 = vld [vmem:[#allocation2 + $0x18] sm:$0xff]  ;;  %v305_v52 = vld [vmem:[#allocation7 + $0x168] sm:$0xff] }
  0x21   :  { %193 = vmatpush.msra.mxu2 %v102_v25  ;;  %v306_v53 = vld [vmem:[#allocation7 + $0x170] sm:$0xff]  ;;  %v681_v54 = vld [vmem:[#allocation7 + $0x178] sm:$0xff]  ;;  %308 = vmatpush.msra.mxu3 %v305_v52  ;;  %v684_v57 = vld [vmem:[#allocation7 + $0x160] sm:$0xff] }
  0x22   :  { %164 = vmatpush.msra.mxu1 %v101_v26  ;;  %136 = vmatpush.msra.mxu0 %v97_v27  ;;  %v302_v55 = vld [vmem:[#allocation7 + $0x150] sm:$0xff]  ;;  %v303_v56 = vld [vmem:[#allocation7 + $0x158] sm:$0xff]  ;;  %v300_v59 = vld [vmem:[#allocation7 + $0x140] sm:$0xff] }
  0x23   :  { %194 = vmatpush.msra.mxu2 %v99_v28  ;;  %309 = vmatpush.msra.mxu3 %v302_v55  ;;  %v299_v58 = vld [vmem:[#allocation7 + $0x138] sm:$0xff]  ;;  %v687_v60 = vld [vmem:[#allocation7 + $0x148] sm:$0xff]  ;;  %v296_v61 = vld [vmem:[#allocation7 + $0x120] sm:$0xff] }
  0x24   :  { %165 = vmatpush.msra.mxu1 %v98_v29  ;;  %137 = vmatpush.msra.mxu0 %v94_v30  ;;  %v297_v62 = vld [vmem:[#allocation7 + $0x128] sm:$0xff]  ;;  %v690_v63 = vld [vmem:[#allocation7 + $0x130] sm:$0xff]  ;;  %v693_v2 = vld [vmem:[#allocation7 + $0x118] sm:$0xff] }
  0x25   :  { %195 = vmatpush.msra.mxu2 %v96_v31  ;;  %310 = vmatpush.msra.mxu3 %v299_v58  ;;  %v293_v0 = vld [vmem:[#allocation7 + $0x108] sm:$0xff]  ;;  %v294_v1 = vld [vmem:[#allocation7 + $0x110] sm:$0xff]  ;;  %v291_v4 = vld [vmem:[#allocation7 + $0xf8] sm:$0xff] }
  0x26   :  { %166 = vmatpush.msra.mxu1 %v95_v32  ;;  %138 = vmatpush.msra.mxu0 %v91_v33  ;;  %v290_v3 = vld [vmem:[#allocation7 + $0xf0] sm:$0xff]  ;;  %v696_v5 = vld [vmem:[#allocation7 + $0x100] sm:$0xff]  ;;  %v287_v6 = vld [vmem:[#allocation7 + $0xd8] sm:$0xff] }
  0x27   :  { %196 = vmatpush.msra.mxu2 %v93_v34  ;;  %311 = vmatpush.msra.mxu3 %v296_v61  ;;  %v288_v7 = vld [vmem:[#allocation7 + $0xe0] sm:$0xff]  ;;  %v699_v8 = vld [vmem:[#allocation7 + $0xe8] sm:$0xff]  ;;  %v702_v11 = vld [vmem:[#allocation7 + $0xd0] sm:$0xff] }
  0x28   :  { %167 = vmatpush.msra.mxu1 %v92_v35  ;;  %139 = vmatpush.msra.mxu0 %v88_v36  ;;  %v284_v9 = vld [vmem:[#allocation7 + $0xc0] sm:$0xff]  ;;  %v285_v10 = vld [vmem:[#allocation7 + $0xc8] sm:$0xff]  ;;  %v282_v13 = vld [vmem:[#allocation7 + $0xb0] sm:$0xff] }
  0x29   :  { %197 = vmatpush.msra.mxu2 %v90_v37  ;;  %312 = vmatpush.msra.mxu3 %v293_v0  ;;  %v281_v12 = vld [vmem:[#allocation7 + $0xa8] sm:$0xff]  ;;  %v705_v14 = vld [vmem:[#allocation7 + $0xb8] sm:$0xff]  ;;  %v278_v15 = vld [vmem:[#allocation7 + $0x90] sm:$0xff] }
  0x2a   :  { %168 = vmatpush.msra.mxu1 %v89_v38  ;;  %140 = vmatpush.msra.mxu0 %v85_v39  ;;  %v279_v16 = vld [vmem:[#allocation7 + $0x98] sm:$0xff]  ;;  %v708_v17 = vld [vmem:[#allocation7 + $0xa0] sm:$0xff]  ;;  %v711_v20 = vld [vmem:[#allocation7 + $0x88] sm:$0xff] }
  0x2b   :  { %198 = vmatpush.msra.mxu2 %v87_v40  ;;  %313 = vmatpush.msra.mxu3 %v290_v3  ;;  %v275_v18 = vld [vmem:[#allocation7 + $0x78] sm:$0xff]  ;;  %v276_v19 = vld [vmem:[#allocation7 + $0x80] sm:$0xff]  ;;  %v273_v22 = vld [vmem:[#allocation7 + $0x68] sm:$0xff] }
  0x2c   :  { %169 = vmatpush.msra.mxu1 %v86_v41  ;;  %141 = vmatpush.msra.mxu0 %v82_v42  ;;  %v272_v21 = vld [vmem:[#allocation7 + $0x60] sm:$0xff]  ;;  %v714_v23 = vld [vmem:[#allocation7 + $0x70] sm:$0xff]  ;;  %v269_v24 = vld [vmem:[#allocation7 + $0x48] sm:$0xff] }
  0x2d   :  { %199 = vmatpush.msra.mxu2 %v84_v43  ;;  %314 = vmatpush.msra.mxu3 %v287_v6  ;;  %v270_v25 = vld [vmem:[#allocation7 + $0x50] sm:$0xff]  ;;  %v717_v26 = vld [vmem:[#allocation7 + $0x58] sm:$0xff]  ;;  %v720_v29 = vld [vmem:[#allocation7 + $0x40] sm:$0xff]  ;;  %v68_v43 = vlaneseq }
  0x2e   :  { %170 = vmatpush.msra.mxu1 %v83_v44  ;;  %142 = vmatpush.msra.mxu0 %v79_v45  ;;  %v266_v27 = vld [vmem:[#allocation7 + $0x30] sm:$0xff]  ;;  %v267_v28 = vld [vmem:[#allocation7 + $0x38] sm:$0xff]  ;;  %v264_v32 = vld [vmem:[#allocation7 + $0x20] sm:$0xff] }
  0x2f   :  { %200 = vmatpush.msra.mxu2 %v81_v46  ;;  %143 = vmatmul.f32.vlgmr.msra.gmra.mxu0 %v661_v47  ;;  %v263_v31 = vld [vmem:[#allocation7 + $0x18] sm:$0xff]  ;;  %v723_v33 = vld [vmem:[#allocation7 + $0x28] sm:$0xff]  ;;  %v260_v34 = vld [vmem:[#allocation7] sm:$0xff]  ;;  %v737_v44 = vshrl.u32 %v68_v43, 7 }
  0x30   :  { %201 = vmatmul.f32.vlgmr.msra.gmra.mxu2 %v661_v47  ;;  %171 = vmatpush.msra.mxu1 %v80_v48  ;;  %v261_v35 = vld [vmem:[#allocation7 + $0x8] sm:$0xff]  ;;  %v725_v36 = vld [vmem:[#allocation7 + $0x10] sm:$0xff]  ;;  %v508_v43 = vld [vmem:[%s822_s4] ss:$0 sm:$0xff]  ;;  %s618_s4 = smov [#allocation8]  }
  0x31   :  { %172 = vmatmul.f32.vlgmr.msra.gmra.mxu1 %v661_v47  ;;  %337 = vmatpush.msrb.mxu0 %v306_v53  ;;  %vm218_vm0 = vcmp.lt.s32.totalorder %v737_v44, 1  ;;  %vm71_vm1 = vcmp.ne.s32.totalorder %v737_v44, 0  ;;  %vm231_vm2 = vcmp.lt.s32.totalorder %v737_v44, 7  ;;  %s451_s12 = sshll.u32 %s618_s4, 4  ;;  %s452_s12 = int_to_ptr.vmem [resolvable:$true] %s451_s12 }
  0x32   :  { %366 = vmatpush.msrb.mxu1 %v681_v54  ;;  %467 = vmatpush.msrb.mxu2 %v306_v53  ;;  %v742_v53 = vadd.s32 8, %v737_v44 }
  0x33   :  { %338 = vmatpush.msrb.mxu0 %v303_v56  ;;  %315 = vmatpush.msra.mxu3 %v284_v9 }
  0x34   :  { %367 = vmatpush.msrb.mxu1 %v684_v57  ;;  %468 = vmatpush.msrb.mxu2 %v303_v56  ;;  %vm74_vm3 = vcmp.ne.s32.totalorder %v742_v53, 15 }
  0x35   :  { %339 = vmatpush.msrb.mxu0 %v300_v59  ;;  %316 = vmatpush.msra.mxu3 %v281_v12 }
  0x36   :  { %368 = vmatpush.msrb.mxu1 %v687_v60  ;;  %469 = vmatpush.msrb.mxu2 %v300_v59 }
  0x37   :  { %146 = vmatmul.f32.gmra.mxu0 %v666_v49  ;;  %317 = vmatpush.msra.mxu3 %v278_v15 }
  0x38   :  { %204 = vmatmul.f32.gmra.mxu2 %v666_v49  ;;  %340 = vmatpush.msrb.mxu0 %v297_v62 }
  0x39   :  { %175 = vmatmul.f32.gmra.mxu1 %v666_v49  ;;  %470 = vmatpush.msrb.mxu2 %v297_v62 }
  0x3a   :  { %369 = vmatpush.msrb.mxu1 %v690_v63  ;;  %341 = vmatpush.msrb.mxu0 %v294_v1 }
  0x3b   :  { %471 = vmatpush.msrb.mxu2 %v294_v1  ;;  %318 = vmatpush.msra.mxu3 %v275_v18 }
  0x3c   :  { %370 = vmatpush.msrb.mxu1 %v693_v2  ;;  %342 = vmatpush.msrb.mxu0 %v291_v4 }
  0x3d   :  { %472 = vmatpush.msrb.mxu2 %v291_v4  ;;  %319 = vmatpush.msra.mxu3 %v272_v21 }
  0x3e   :  { %371 = vmatpush.msrb.mxu1 %v696_v5  ;;  %343 = vmatpush.msrb.mxu0 %v288_v7 }
  0x3f   :  { %149 = vmatmul.f32.gmra.mxu0 %v671_v50  ;;  %473 = vmatpush.msrb.mxu2 %v288_v7  ;;  %v507_v7 = vld [vmem:[%s820_s2] ss:$0 sm:$0xff] }
  0x40   :  { %207 = vmatmul.f32.gmra.mxu2 %v671_v50  ;;  %372 = vmatpush.msrb.mxu1 %v699_v8 }
  0x41   :  { %178 = vmatmul.f32.gmra.mxu1 %v671_v50  ;;  %344 = vmatpush.msrb.mxu0 %v285_v10 }
  0x42   :  { %373 = vmatpush.msrb.mxu1 %v702_v11  ;;  %474 = vmatpush.msrb.mxu2 %v285_v10 }
  0x43   :  { %345 = vmatpush.msrb.mxu0 %v282_v13  ;;  %320 = vmatpush.msra.mxu3 %v269_v24 }
  0x44   :  { %374 = vmatpush.msrb.mxu1 %v705_v14  ;;  %475 = vmatpush.msrb.mxu2 %v282_v13 }
  0x45   :  { %346 = vmatpush.msrb.mxu0 %v279_v16  ;;  %321 = vmatpush.msra.mxu3 %v266_v27 }
  0x46   :  { %375 = vmatpush.msrb.mxu1 %v708_v17  ;;  %476 = vmatpush.msrb.mxu2 %v279_v16 }
  0x47   :  { %152 = vmatmul.f32.gmra.mxu0 %v676_v51  ;;  %322 = vmatpush.msra.mxu3 %v263_v31 }
  0x48   :  { %210 = vmatmul.f32.gmra.mxu2 %v676_v51  ;;  %347 = vmatpush.msrb.mxu0 %v276_v19 }
  0x49   :  { %181 = vmatmul.f32.gmra.mxu1 %v676_v51  ;;  %477 = vmatpush.msrb.mxu2 %v276_v19 }
  0x4a   :  { %376 = vmatpush.msrb.mxu1 %v711_v20  ;;  %348 = vmatpush.msrb.mxu0 %v273_v22 }
  0x4b   :  { %478 = vmatpush.msrb.mxu2 %v273_v22  ;;  %323 = vmatpush.msra.mxu3 %v260_v34 }
  0x4c   :  { %377 = vmatpush.msrb.mxu1 %v714_v23  ;;  %349 = vmatpush.msrb.mxu0 %v270_v25 }
  0x4d   :  { %479 = vmatpush.msrb.mxu2 %v270_v25  ;;  %483 = vmatpush.msrb.mxu3 %v681_v54 }
  0x4e   :  { %378 = vmatpush.msrb.mxu1 %v717_v26  ;;  %350 = vmatpush.msrb.mxu0 %v267_v28 }
  0x4f   :  { %480 = vmatpush.msrb.mxu2 %v267_v28  ;;  %484 = vmatpush.msrb.mxu3 %v684_v57 }
  0x50   :  { %379 = vmatpush.msrb.mxu1 %v720_v29  ;;  %351 = vmatpush.msrb.mxu0 %v264_v32 }
  0x51   :  { %481 = vmatpush.msrb.mxu2 %v264_v32  ;;  %485 = vmatpush.msrb.mxu3 %v687_v60 }
  0x52   :  { %380 = vmatpush.msrb.mxu1 %v723_v33  ;;  %352 = vmatpush.msrb.mxu0 %v261_v35 }
  0x53   :  { %482 = vmatpush.msrb.mxu2 %v261_v35  ;;  %486 = vmatpush.msrb.mxu3 %v690_v63 }
  0x54   :  { %381 = vmatpush.msrb.mxu1 %v725_v36 }
  0x55   :  { %487 = vmatpush.msrb.mxu3 %v693_v2 }
  0x57   :  { %488 = vmatpush.msrb.mxu3 %v696_v5 }
  0x59   :  { %489 = vmatpush.msrb.mxu3 %v699_v8 }
  0x5b   :  { %490 = vmatpush.msrb.mxu3 %v702_v11 }
  0x5d   :  { %491 = vmatpush.msrb.mxu3 %v705_v14 }
  0x5f   :  { %492 = vmatpush.msrb.mxu3 %v708_v17 }
  0x61   :  { %493 = vmatpush.msrb.mxu3 %v711_v20 }
  0x63   :  { %494 = vmatpush.msrb.mxu3 %v714_v23 }
  0x65   :  { %495 = vmatpush.msrb.mxu3 %v717_v26 }
  0x67   :  { %496 = vmatpush.msrb.mxu3 %v720_v29 }
  0x69   :  { %497 = vmatpush.msrb.mxu3 %v723_v33 }
  0x6b   :  { %498 = vmatpush.msrb.mxu3 %v725_v36 }
  0xac   :  { %v144_v30 = vpop.f32.mrf.mxu0 }
  0xad   :  { %v214_v55 = vrot.slane %v144_v30, 7 }
  0xae   :  { %v173_v37 = vpop.f32.mrf.mxu1 }
  0xb3   :  { %v202_v38 = vpop.f32.mrf.mxu2 }
  0xb4   :  { %v147_v39 = vpop.f32.mrf.mxu0  ;;  %v227_v58 = vrot.slane %v202_v38, 1 }
  0xb5   :  { %v215_v52 = vrot.slane %v147_v39, 7 }
  0xb6   :  { %v176_v40 = vpop.f32.mrf.mxu1 }
  0xb7   :  { %v221_v63 = vsel %vm218_vm0, %v214_v55, %v215_v52 }
  0xb8   :  { %v241_v8 = vadd.f32 %v221_v63, %v176_v40 }
  0xbb   :  { %v205_v41 = vpop.f32.mrf.mxu2 }
  0xbc   :  { %v150_v42 = vpop.f32.mrf.mxu0  ;;  %v228_v59 = vrot.slane %v205_v41, 1 }
  0xbd   :  { %v216_v45 = vrot.slane %v150_v42, 7 }
  0xbe   :  { %v179_v48 = vpop.f32.mrf.mxu1  ;;  %v234_v3 = vsel %vm231_vm2, %v227_v58, %v228_v59 }
  0xbf   :  { %v220_v60 = vsel %vm218_vm0, %v215_v52, %v216_v45 }
  0xc0   :  { %v225_v0 = vsel %vm71_vm1, %v220_v60, 0.0 }
  0xc1   :  { %v242_v9 = vadd.f32 %v225_v0, %v179_v48 }
  0xc3   :  { %v208_v46 = vpop.f32.mrf.mxu2 }
  0xc4   :  { %v153_v54 = vpop.f32.mrf.mxu0  ;;  %v229_v56 = vrot.slane %v208_v46, 1 }
  0xc5   :  { %v217_v57 = vrot.slane %v153_v54, 7 }
  0xc6   :  { %v233_v1 = vsel %vm231_vm2, %v228_v59, %v229_v56  ;;  %v182_v11 = vpop.f32.mrf.mxu1 }
  0xc7   :  { %v222_v61 = vsel %vm218_vm0, %v217_v57, %v214_v55  ;;  %v237_v10 = vsel %vm74_vm3, %v233_v1, 0.0  ;;  %v219_v12 = vsel %vm218_vm0, %v216_v45, %v217_v57 }
  0xc8   :  { %v223_v62 = vsel %vm71_vm1, %v222_v61, 0.0  ;;  %v245_v19 = vadd.f32 %v241_v8, %v237_v10  ;;  %v243_v20 = vadd.f32 %v219_v12, %v182_v11 }
  0xc9   :  { %v240_v2 = vadd.f32 %v223_v62, %v173_v37 }
  0xca   :  { %v253_v24 = vadd.f32 %v507_v7, %v245_v19 }
  0xcb   :  { %v211_v4 = vpop.f32.mrf.mxu2  ;;  %v244_v6 = vadd.f32 %v240_v2, %v234_v3 }
  0xcc   :  { %v230_v5 = vrot.slane %v211_v4, 1  ;;  %v257_v26 = vmax.f32 %v253_v24, 0.0 }
  0xcd   :  { %v252_v15 = vadd.f32 %v507_v7, %v244_v6 }
  0xce   :  { %v232_v13 = vsel %vm231_vm2, %v229_v56, %v230_v5  ;;  %v235_v14 = vsel %vm231_vm2, %v230_v5, %v227_v58 }
  0xcf   :  { %v246_v16 = vadd.f32 %v242_v9, %v232_v13  ;;  %v239_v17 = vsel %vm74_vm3, %v235_v14, 0.0  ;;  %v256_v18 = vmax.f32 %v252_v15, 0.0 }
  0xd0   :  { %v247_v23 = vadd.f32 %v243_v20, %v239_v17 }
  0xd1   :  { %v254_v21 = vadd.f32 %v507_v7, %v246_v16  ;;  %324 = vmatmul.f32.vlgmr.msra.gmra.mxu3 %v256_v18  ;;  %353 = vmatmul.f32.vlgmr.msrb.gmra.mxu0 %v256_v18 }
  0xd2   :  { %382 = vmatmul.f32.vlgmr.msrb.gmra.mxu1 %v256_v18  ;;  %v255_v25 = vadd.f32 %v507_v7, %v247_v23 }
  0xd3   :  { %v258_v22 = vmax.f32 %v254_v21, 0.0 }
  0xd4   :  { %v259_v27 = vmax.f32 %v255_v25, 0.0 }
  0xd5   :  { %359 = vmatmul.f32.vlgmr.msrb.gmra.mxu2 %v258_v22 }
  0xd9   :  { %327 = vmatmul.f32.gmra.mxu3 %v257_v26  ;;  %356 = vmatmul.f32.gmra.mxu0 %v257_v26 }
  0xda   :  { %385 = vmatmul.f32.gmra.mxu1 %v257_v26 }
  0xdd   :  { %362 = vmatmul.f32.gmra.mxu2 %v259_v27 }
  0xe1   :  { %330 = vmatmul.f32.gmra.mxu3 %v258_v22 }
  0xe9   :  { %333 = vmatmul.f32.gmra.mxu3 %v259_v27 }
  0xf1   :  { %388 = vmatmul.f32.vlgmr.msrb.gmra.mxu3 %v258_v22 }
  0xf9   :  { %391 = vmatmul.f32.gmra.mxu3 %v259_v27 }
 0x14e   :  { %v354_v33 = vpop.f32.mrf.mxu0 }
 0x14f   :  { %v383_v30 = vpop.f32.mrf.mxu1 }
 0x150   :  { %v407_v39 = vrot.slane %v383_v30, 1 }
 0x154   :  { %v325_v28 = vpop.f32.mrf.mxu3 }
 0x155   :  { %v395_v35 = vrot.slane %v325_v28, 7 }
 0x156   :  { %v357_v58 = vpop.f32.mrf.mxu0 }
 0x157   :  { %v386_v32 = vpop.f32.mrf.mxu1 }
 0x158   :  { %v408_v37 = vrot.slane %v386_v32, 1  ;;  %v360_v48 = vpop.f32.mrf.mxu2 }
 0x15a   :  { %v413_v45 = vsel %vm231_vm2, %v407_v39, %v408_v37 }
 0x15c   :  { %v328_v29 = vpop.f32.mrf.mxu3 }
 0x15d   :  { %v396_v40 = vrot.slane %v328_v29, 7 }
 0x15f   :  { %v401_v52 = vsel %vm218_vm0, %v395_v35, %v396_v40 }
 0x160   :  { %v420_v59 = vadd.f32 %v401_v52, %v357_v58  ;;  %v363_v7 = vpop.f32.mrf.mxu2 }
 0x164   :  { %v331_v31 = vpop.f32.mrf.mxu3 }
 0x165   :  { %v397_v54 = vrot.slane %v331_v31, 7 }
 0x167   :  { %v400_v62 = vsel %vm218_vm0, %v396_v40, %v397_v54 }
 0x168   :  { %v405_v2 = vsel %vm71_vm1, %v400_v62, 0.0 }
 0x169   :  { %v421_v8 = vadd.f32 %v405_v2, %v360_v48 }
 0x16c   :  { %v334_v34 = vpop.f32.mrf.mxu3 }
 0x16d   :  { %v398_v36 = vrot.slane %v334_v34, 7 }
 0x16f   :  { %v402_v38 = vsel %vm218_vm0, %v398_v36, %v395_v35  ;;  %v399_v4 = vsel %vm218_vm0, %v397_v54, %v398_v36 }
 0x170   :  { %v403_v41 = vsel %vm71_vm1, %v402_v38, 0.0  ;;  %v422_v9 = vadd.f32 %v399_v4, %v363_v7 }
 0x171   :  { %v419_v42 = vadd.f32 %v403_v41, %v354_v33 }
 0x173   :  { %v423_v46 = vadd.f32 %v419_v42, %v413_v45 }
 0x174   :  { %v389_v55 = vpop.f32.mrf.mxu3 }
 0x175   :  { %v431_v56 = vadd.f32 %v508_v43, %v423_v46  ;;  %v409_v57 = vrot.slane %v389_v55, 1 }
 0x177   :  { %v435_v60 = vadd.f32 %v431_v56, %v661_v47  ;;  %v412_v61 = vsel %vm231_vm2, %v408_v37, %v409_v57 }
 0x178   :  { %v416_v63 = vsel %vm74_vm3, %v412_v61, 0.0 }
 0x179   :  { %v439_v0 = vmax.f32 %v435_v60, 0.0  ;;  %v424_v1 = vadd.f32 %v420_v59, %v416_v63 }
 0x17b   :  { %443 = vst [vmem:[#allocation8] sm:$0xff] %v439_v0  ;;  %v432_v3 = vadd.f32 %v508_v43, %v424_v1 }
 0x17c   :  { %v392_v47 = vpop.f32.mrf.mxu3 }
 0x17d   :  { %v436_v5 = vadd.f32 %v432_v3, %v666_v49  ;;  %v410_v6 = vrot.slane %v392_v47, 1 }
 0x17f   :  { %v440_v10 = vmax.f32 %v436_v5, 0.0  ;;  %v411_v11 = vsel %vm231_vm2, %v409_v57, %v410_v6  ;;  %v414_v12 = vsel %vm231_vm2, %v410_v6, %v407_v39 }
 0x180   :  { %v418_v13 = vsel %vm74_vm3, %v414_v12, 0.0  ;;  %v425_v14 = vadd.f32 %v421_v8, %v411_v11 }
 0x181   :  { %444 = vst [vmem:[#allocation8 + $0x8] sm:$0xff] %v440_v10  ;;  %v426_v15 = vadd.f32 %v422_v9, %v418_v13 }
 0x182   :  { %v433_v16 = vadd.f32 %v508_v43, %v425_v14 }
 0x183   :  { %v434_v17 = vadd.f32 %v508_v43, %v426_v15 }
 0x184   :  { %v437_v49 = vadd.f32 %v433_v16, %v671_v50 }
 0x185   :  { %v438_v18 = vadd.f32 %v434_v17, %v676_v51 }
 0x186   :  { %v441_v44 = vmax.f32 %v437_v49, 0.0 }
 0x187   :  { %v442_v19 = vmax.f32 %v438_v18, 0.0 }
 0x188   :  { %445 = vst [vmem:[#allocation8 + $0x10] sm:$0xff] %v441_v44 }
 0x189   :  { %446 = vst [vmem:[#allocation8 + $0x18] sm:$0xff] %v442_v19 }
 0x18a   :  { %459 = dma.vmem_to_hbm [thread:$0]  %s452_s12, 512, %s454_s15, [#allocation4], %s615_s30, %s615_s30, %s616_s6  }
 0x18b   :  { %609 = dma.done.wait [#allocation4], 512  }
 0x18c   :  { %610 = vsyncadd [#allocation4], 4294966784 }
 0x18d   :  { %464 = vsyncpa [#allocation3], 1 }
 0x18e   :  { %465 = vsyncpa [#allocation6], 1 }
 0x18f   :  { %466 = vsyncpa [#allocation4], 1 }

</bundles_post_ra>
